<compile_context>
chip_gen: v6e
topology: v6e:2x2x1
jax: 0.10.0
libtpu: 0.0.40
codegen_flags: <defaults>
</compile_context>

<pallas_src>
import jax
import jax.numpy as jnp
from jax.experimental import pallas as pl
from jax.experimental.pallas import tpu as pltpu


def _dma_copy3_kernel(x_ref, y_ref, z_ref, xo_ref, yo_ref, zo_ref, sems):
    """Fused HBM->HBM copy of three equal-numel tensors via async DMA."""
    cx = pltpu.make_async_copy(x_ref, xo_ref, sems.at[0])
    cy = pltpu.make_async_copy(y_ref, yo_ref, sems.at[1])
    cz = pltpu.make_async_copy(z_ref, zo_ref, sems.at[2])
    # Start all three so the DMA engines overlap, then wait for completion.
    cx.start()
    cy.start()
    cz.start()
    cx.wait()
    cy.wait()
    cz.wait()


def _reshape_as_fused(x, y, z, x_shape, y_shape, z_shape):
    """One fused Pallas HBM->HBM copy of x/y/z at their target shapes."""
    n = x.size
    assert y.size == n and z.size == n, "reshape_as chain requires equal numel"

    # Metadata-only reshapes so DMA src/dst shapes match exactly.
    xs = x.reshape(x_shape)
    ys = y.reshape(y_shape)
    zs = z.reshape(z_shape)

    any_spec = pl.BlockSpec(memory_space=pl.ANY)

    xo, yo, zo = pl.pallas_call(
        _dma_copy3_kernel,
        out_shape=(
            jax.ShapeDtypeStruct(x_shape, x.dtype),
            jax.ShapeDtypeStruct(y_shape, y.dtype),
            jax.ShapeDtypeStruct(z_shape, z.dtype),
        ),
        in_specs=[any_spec, any_spec, any_spec],
        out_specs=(any_spec, any_spec, any_spec),
        scratch_shapes=[pltpu.SemaphoreType.DMA((3,))],
    )(xs, ys, zs)

    return xo, yo, zo


def model_forward(x, y, z):
    """Exact semantics of the PyTorch Model.forward.

    x -> y.shape ; y -> z.shape ; z -> (new x).shape == y's original shape.
    """
    return _reshape_as_fused(x, y, z, y.shape, z.shape, y.shape)


if __name__ == "__main__":
    key = jax.random.PRNGKey(0)
    kx, ky, kz = jax.random.split(key, 3)

    # All three tensors share numel: 2*4*16*16 = 2*8*128 = 8*256 = 2048.
    x = jax.random.normal(kx, (2, 4, 16, 16), dtype=jnp.float32)
    y = jax.random.normal(ky, (2, 8, 128), dtype=jnp.float32)
    z = jax.random.normal(kz, (8, 256), dtype=jnp.float32)

    fwd = jax.jit(model_forward)
    x_out, y_out, z_out = fwd(x, y, z)
    jax.block_until_ready((x_out, y_out, z_out))

    # Sanity checks against the pure-JAX reference semantics.
    assert x_out.shape == y.shape
    assert y_out.shape == z.shape
    assert z_out.shape == y.shape
    assert jnp.array_equal(x_out, x.reshape(y.shape))
    assert jnp.array_equal(y_out, y.reshape(z.shape))
    assert jnp.array_equal(z_out, z.reshape(y.shape))

    print("KERNEL_OK")
</pallas_src>

<mosaic_0001>
module attributes {stable_mosaic.version = 11 : i64} {
  func.func @_dma_copy3_kernel(%arg0: memref<2x8x128xf32, #tpu.memory_space<any>>, %arg1: memref<8x256xf32, #tpu.memory_space<any>>, %arg2: memref<2x8x128xf32, #tpu.memory_space<any>>, %arg3: memref<2x8x128xf32, #tpu.memory_space<any>>, %arg4: memref<8x256xf32, #tpu.memory_space<any>>, %arg5: memref<2x8x128xf32, #tpu.memory_space<any>>, %arg6: memref<3x!tpu.dma_semaphore, #tpu.memory_space<semaphore_mem>>) attributes {dimension_semantics = [], scalar_prefetch = 0 : i64, scratch_operands = 1 : i64, tpu.core_type = #tpu.core_type<tc>} {
    %c0_i32 = arith.constant 0 : i32
    %0 = tpu.memref_slice %arg6[%c0_i32] : memref<3x!tpu.dma_semaphore, #tpu.memory_space<semaphore_mem>> -> memref<1x!tpu.dma_semaphore, #tpu.memory_space<semaphore_mem>>
    %1 = tpu.memref_squeeze %0 : memref<1x!tpu.dma_semaphore, #tpu.memory_space<semaphore_mem>> -> memref<!tpu.dma_semaphore, #tpu.memory_space<semaphore_mem>>
    tpu.enqueue_dma source(%arg0 : memref<2x8x128xf32, #tpu.memory_space<any>>) target(%arg3 : memref<2x8x128xf32, #tpu.memory_space<any>>) target_semaphore(%1 : memref<!tpu.dma_semaphore, #tpu.memory_space<semaphore_mem>>)
    %c1_i32 = arith.constant 1 : i32
    %2 = tpu.memref_slice %arg6[%c1_i32] : memref<3x!tpu.dma_semaphore, #tpu.memory_space<semaphore_mem>> -> memref<1x!tpu.dma_semaphore, #tpu.memory_space<semaphore_mem>>
    %3 = tpu.memref_squeeze %2 : memref<1x!tpu.dma_semaphore, #tpu.memory_space<semaphore_mem>> -> memref<!tpu.dma_semaphore, #tpu.memory_space<semaphore_mem>>
    tpu.enqueue_dma source(%arg1 : memref<8x256xf32, #tpu.memory_space<any>>) target(%arg4 : memref<8x256xf32, #tpu.memory_space<any>>) target_semaphore(%3 : memref<!tpu.dma_semaphore, #tpu.memory_space<semaphore_mem>>)
    %c2_i32 = arith.constant 2 : i32
    %4 = tpu.memref_slice %arg6[%c2_i32] : memref<3x!tpu.dma_semaphore, #tpu.memory_space<semaphore_mem>> -> memref<1x!tpu.dma_semaphore, #tpu.memory_space<semaphore_mem>>
    %5 = tpu.memref_squeeze %4 : memref<1x!tpu.dma_semaphore, #tpu.memory_space<semaphore_mem>> -> memref<!tpu.dma_semaphore, #tpu.memory_space<semaphore_mem>>
    tpu.enqueue_dma source(%arg2 : memref<2x8x128xf32, #tpu.memory_space<any>>) target(%arg5 : memref<2x8x128xf32, #tpu.memory_space<any>>) target_semaphore(%5 : memref<!tpu.dma_semaphore, #tpu.memory_space<semaphore_mem>>)
    %c0_i32_0 = arith.constant 0 : i32
    %6 = tpu.memref_slice %arg6[%c0_i32_0] : memref<3x!tpu.dma_semaphore, #tpu.memory_space<semaphore_mem>> -> memref<1x!tpu.dma_semaphore, #tpu.memory_space<semaphore_mem>>
    %7 = tpu.memref_squeeze %6 : memref<1x!tpu.dma_semaphore, #tpu.memory_space<semaphore_mem>> -> memref<!tpu.dma_semaphore, #tpu.memory_space<semaphore_mem>>
    tpu.wait_dma2 semaphore(%7 : memref<!tpu.dma_semaphore, #tpu.memory_space<semaphore_mem>>) src(%arg0 : memref<2x8x128xf32, #tpu.memory_space<any>>) dst(%arg3 : memref<2x8x128xf32, #tpu.memory_space<any>>)
    %c1_i32_1 = arith.constant 1 : i32
    %8 = tpu.memref_slice %arg6[%c1_i32_1] : memref<3x!tpu.dma_semaphore, #tpu.memory_space<semaphore_mem>> -> memref<1x!tpu.dma_semaphore, #tpu.memory_space<semaphore_mem>>
    %9 = tpu.memref_squeeze %8 : memref<1x!tpu.dma_semaphore, #tpu.memory_space<semaphore_mem>> -> memref<!tpu.dma_semaphore, #tpu.memory_space<semaphore_mem>>
    tpu.wait_dma2 semaphore(%9 : memref<!tpu.dma_semaphore, #tpu.memory_space<semaphore_mem>>) src(%arg1 : memref<8x256xf32, #tpu.memory_space<any>>) dst(%arg4 : memref<8x256xf32, #tpu.memory_space<any>>)
    %c2_i32_2 = arith.constant 2 : i32
    %10 = tpu.memref_slice %arg6[%c2_i32_2] : memref<3x!tpu.dma_semaphore, #tpu.memory_space<semaphore_mem>> -> memref<1x!tpu.dma_semaphore, #tpu.memory_space<semaphore_mem>>
    %11 = tpu.memref_squeeze %10 : memref<1x!tpu.dma_semaphore, #tpu.memory_space<semaphore_mem>> -> memref<!tpu.dma_semaphore, #tpu.memory_space<semaphore_mem>>
    tpu.wait_dma2 semaphore(%11 : memref<!tpu.dma_semaphore, #tpu.memory_space<semaphore_mem>>) src(%arg2 : memref<2x8x128xf32, #tpu.memory_space<any>>) dst(%arg5 : memref<2x8x128xf32, #tpu.memory_space<any>>)
    return
  }
}

</mosaic_0001>

<bundles_post_ra>
// kernel: model_forward.1
= control target key start
LH: loop header
LB: loop body
LE: loop exit
PB: predicated region body
PF: predicated region fallthrough
CT: control target
= control target key end

     0   :  { %s193_s0 = inlined_call_operand.vmem [shape: f32[2,8,128], index: 0, kind: input, shape index: {}]   ;;  %s194_s3 = inlined_call_operand.hbm [shape: f32[2,8,128], index: 3, kind: output, shape index: {0}]   ;;  %s195_s1 = inlined_call_operand.vmem [shape: f32[8,256], index: 1, kind: input, shape index: {}]   ;;  %s196_s4 = inlined_call_operand.hbm [shape: f32[8,256], index: 4, kind: output, shape index: {1}]   ;;  %s197_s2 = inlined_call_operand.vmem [shape: f32[2,8,128], index: 2, kind: input, shape index: {}]   ;;  %s198_s5 = inlined_call_operand.hbm [shape: f32[2,8,128], index: 5, kind: output, shape index: {2}]  }
   0x1   :  { %s18_s20 = sshll.u32 %s193_s0, 4  ;;  %s30_s23 = sshll.u32 %s195_s1, 4  ;;  %s19_s20 = int_to_ptr.vmem [resolvable:$true] %s18_s20  ;;  %s31_s23 = int_to_ptr.vmem [resolvable:$true] %s30_s23 }
   0x2   :  { %s79_s24 = scalar_lea.vmem %s19_s20, 256  ;;  %p84_p1 = scmp.lt.s32.totalorder %s19_s20, %s19_s20 }
   0x3   :  { %p80_p0 = scmp.ne.s32.totalorder %s19_s20, %s79_s24  ;;  %p85_p2 = scmp.lt.s32.totalorder %s79_s24, %s79_s24 }
   0x5   :  { %p86_p3 = por %p85_p2, %p84_p1 }
   0x7   :  { %p87_p4 = pnand %p86_p3, %p80_p0 }
   0x9   :  { %90 = shalt.err (!%p87_p4)  }
   0xa   :  { %21 = dma.vmem_to_hbm [thread:$0]  %s19_s20, 256, %s194_s3, [#allocation2] }
   0xb   :  { %s99_s27 = scalar_lea.vmem %s31_s23, 256  ;;  %p104_p6 = scmp.lt.s32.totalorder %s31_s23, %s31_s23 }
   0xc   :  { %p100_p5 = scmp.ne.s32.totalorder %s31_s23, %s99_s27  ;;  %p105_p7 = scmp.lt.s32.totalorder %s99_s27, %s99_s27 }
   0xe   :  { %p106_p8 = por %p105_p7, %p104_p6 }
  0x10   :  { %p107_p9 = pnand %p106_p8, %p100_p5 }
  0x12   :  { %110 = shalt.err (!%p107_p9)  }
  0x13   :  { %33 = dma.vmem_to_hbm [thread:$0]  %s31_s23, 256, %s196_s4, [#allocation2 + $0x1] }
  0x14   :  { %s42_s30 = sshll.u32 %s197_s2, 4  ;;  %s43_s30 = int_to_ptr.vmem [resolvable:$true] %s42_s30 }
  0x15   :  { %s119_s6 = scalar_lea.vmem %s43_s30, 256  ;;  %p124_p11 = scmp.lt.s32.totalorder %s43_s30, %s43_s30 }
  0x16   :  { %p120_p10 = scmp.ne.s32.totalorder %s43_s30, %s119_s6  ;;  %p125_p12 = scmp.lt.s32.totalorder %s119_s6, %s119_s6 }
  0x18   :  { %p126_p13 = por %p125_p12, %p124_p11 }
  0x1a   :  { %p127_p0 = pnand %p126_p13, %p120_p10 }
  0x1c   :  { %130 = shalt.err (!%p127_p0)  }
  0x1d   :  { %45 = dma.vmem_to_hbm [thread:$0]  %s43_s30, 256, %s198_s5, [#allocation2 + $0x2] }
  0x1e   :  { %139 = dma.done.wait [#allocation2], 256 }
  0x1f   :  { %140 = vsyncadd [#allocation2], 4294967040 }
  0x20   :  { %141 = dma.done.wait [#allocation2 + $0x1], 256 }
  0x21   :  { %142 = vsyncadd [#allocation2 + $0x1], 4294967040 }
  0x22   :  { %143 = dma.done.wait [#allocation2 + $0x2], 256 }
  0x23   :  { %144 = vsyncadd [#allocation2 + $0x2], 4294967040 }
  0x24   :  { %56 = vsyncmov [#allocation2] }
  0x27   :  { %s57_s2 = vpop.sfrf %56 }
  0x28   :  { %p76_p1 = scmp.ne.s32.totalorder %s57_s2, 0 }
  0x2a   :  { %61 = shalt.err (%p76_p1)  }
  0x2b   :  { %63 = vsyncmov [#allocation2 + $0x1] }
  0x2e   :  { %s64_s4 = vpop.sfrf %63 }
  0x2f   :  { %p77_p2 = scmp.ne.s32.totalorder %s64_s4, 0 }
  0x31   :  { %68 = shalt.err (%p77_p2)  }
  0x32   :  { %70 = vsyncmov [#allocation2 + $0x2] }
  0x35   :  { %s71_s8 = vpop.sfrf %70 }
  0x36   :  { %p78_p3 = scmp.ne.s32.totalorder %s71_s8, 0 }
  0x38   :  { %75 = shalt.err (%p78_p3)  }

</bundles_post_ra>
